<compile_context>
chip_gen: v7x
topology: tpu7x:2x2x1
jax: 0.10.0
libtpu: 0.0.40
codegen_flags: <defaults>
</compile_context>

<pallas_src>
import functools

import jax
import jax.numpy as jnp
from jax.experimental import pallas as pl
from jax.experimental.pallas import tpu as pltpu

EPS = 1e-5
LANE = 128
SUBLANE = 8


def _round_up(n, m):
    return ((n + m - 1) // m) * m


def _pad2(a, rows, cols):
    r, c = a.shape
    if r == rows and c == cols:
        return a
    return jnp.pad(a, ((0, rows - r), (0, cols - c)))


# -----------------------------------------------------------------------------
# Kernel
# -----------------------------------------------------------------------------
def categorical_nn_kernel(layer_dims, true_batch, *refs):
    """refs = x_ref, (w_hbm_i, vec_i)*n_layers, o_ref, wbuf, sem.

    layer_dims[i] = (in_pad, out_pad) of layer i (static Python ints).
    Weights live in HBM and are double-buffer DMA'd into `wbuf`.
    `vec_i` is a (8, out_pad_i) f32 array: row0=bias, row1=gamma, row2=beta.
    """
    n_layers = len(layer_dims)
    n_hidden = n_layers - 1

    x_ref = refs[0]
    w_refs = [refs[1 + 2 * i] for i in range(n_layers)]
    v_refs = [refs[2 + 2 * i] for i in range(n_layers)]
    o_ref = refs[1 + 2 * n_layers]
    wbuf = refs[2 + 2 * n_layers]
    sem = refs[3 + 2 * n_layers]

    # One DMA descriptor per layer; 2-deep double buffering on `wbuf` slots.
    copies = []
    for i, (fi, fo) in enumerate(layer_dims):
        slot = i % 2
        copies.append(
            pltpu.make_async_copy(w_refs[i], wbuf.at[slot, :fi, :fo],
                                  sem.at[slot]))
    copies[0].start()

    h = x_ref[...].astype(jnp.float32)
    b_pad = h.shape[0]
    masked = b_pad != true_batch
    if masked:
        row_ids = jax.lax.broadcasted_iota(jnp.int32, (b_pad, 1), 0)
        row_mask = row_ids < true_batch
    inv_b = 1.0 / float(true_batch)

    for i in range(n_layers):
        fi, fo = layer_dims[i]
        # Prefetch next layer's weights while waiting on / computing this one.
        if i + 1 < n_layers:
            copies[i + 1].start()
        copies[i].wait()

        w = wbuf[i % 2, :fi, :fo]                     # native dtype (bf16 ok)
        vec = v_refs[i][...]                          # (8, fo) f32
        bias = vec[0:1, :]

        # MXU matmul: activation cast to weight dtype, f32 accumulation.
        h = jnp.dot(h.astype(w.dtype), w,
                    preferred_element_type=jnp.float32) + bias

        if i < n_hidden:
            gamma = vec[1:2, :]
            beta = vec[2:3, :]
            # ReLU with the pad-row mask folded into the same select.
            if masked:
                h = jnp.where(row_mask, jnp.maximum(h, 0.0), 0.0)
            else:
                h = jnp.maximum(h, 0.0)
            # BatchNorm1d (training-mode stats, biased variance), shifted
            # two-pass form: mean first, then centered sum of squares.
            mean = jnp.sum(h, axis=0, keepdims=True) * inv_b
            d = h - mean
            if masked:
                d = jnp.where(row_mask, d, 0.0)       # pad rows out of stats
            var = jnp.sum(d * d, axis=0, keepdims=True) * inv_b
            scale = gamma * jax.lax.rsqrt(var + EPS)  # EUP rsqrt
            h = d * scale + beta                      # fused affine (FMA)
        else:
            # Output layer: Sigmoid via numerically stable tanh form (EUP).
            out = 0.5 * jnp.tanh(0.5 * h) + 0.5
            o_ref[...] = out.astype(o_ref.dtype)


# -----------------------------------------------------------------------------
# One-time parameter preparation (pad + cast + stack), reused across calls.
# -----------------------------------------------------------------------------
def prepare_params(params, output_dim, *, weight_dtype=None):
    """params: flat list [w1,b1,gamma1,beta1, ..., w_out,b_out] (unpadded).

    weight_dtype: cast Linear weights once (bf16 recommended on v6e/v7x for
    native MXU + half the weight HBM traffic); elementwise math stays f32.
    """
    n_hidden = (len(params) - 2) // 4
    weights, vecs, dims = [], [], []

    in_dim = params[0].shape[0]
    prev_pad = _round_up(in_dim, LANE)
    f_pad = prev_pad

    def _cast(w):
        return w.astype(weight_dtype) if weight_dtype is not None else w

    for i in range(n_hidden):
        w, b, g, be = params[4 * i:4 * i + 4]
        h_dim = w.shape[1]
        h_pad = _round_up(h_dim, LANE)
        weights.append(_cast(_pad2(w, prev_pad, h_pad)))
        vec = jnp.zeros((SUBLANE, h_pad), jnp.float32)
        vec = vec.at[0, :h_dim].set(b.reshape(-1).astype(jnp.float32))
        vec = vec.at[1, :h_dim].set(g.reshape(-1).astype(jnp.float32))
        vec = vec.at[2, :h_dim].set(be.reshape(-1).astype(jnp.float32))
        vecs.append(vec)
        dims.append((prev_pad, h_pad))
        prev_pad = h_pad

    w_out, b_out = params[-2], params[-1]
    out_pad = _round_up(output_dim, LANE)
    weights.append(_cast(_pad2(w_out, prev_pad, out_pad)))
    vec = jnp.zeros((SUBLANE, out_pad), jnp.float32)
    vec = vec.at[0, :output_dim].set(b_out.reshape(-1).astype(jnp.float32))
    vecs.append(vec)
    dims.append((prev_pad, out_pad))

    return {
        "weights": weights,
        "vecs": vecs,
        "layer_dims": tuple(dims),
        "f_pad": f_pad,
        "out_pad": out_pad,
        "output_dim": output_dim,
    }


# -----------------------------------------------------------------------------
# Forward wrapper
# -----------------------------------------------------------------------------
def categorical_nn_forward(x, prep):
    B, _ = x.shape
    layer_dims = prep["layer_dims"]
    wdtype = jnp.dtype(prep["weights"][0].dtype)

    # Batch padded to the packed sublane count of the weight dtype
    # (8 for f32, 16 for bf16, 32 for fp8) -> full MXU operand tiles.
    pack = max(1, 4 // wdtype.itemsize)
    sub = SUBLANE * pack
    b_pad = _round_up(max(B, sub), sub)
    x_p = _pad2(x, b_pad, prep["f_pad"])

    max_in = max(d[0] for d in layer_dims)
    max_out = max(d[1] for d in layer_dims)

    # Explicit VMEM budget: x + output + stacked vectors + 2 weight slots
    # + a few activation-sized temporaries, with headroom.
    f32b = 4
    act_bytes = b_pad * max(max_in, max_out) * f32b
    need = (x_p.size * x_p.dtype.itemsize
            + b_pad * prep["out_pad"] * f32b
            + sum(v.size * f32b for v in prep["vecs"])
            + 2 * max_in * max_out * wdtype.itemsize
            + 4 * act_bytes)
    vmem_limit = int(min(max(2 * need + (2 << 20), 8 << 20), 60 << 20))

    inputs = [x_p]
    in_specs = [pl.BlockSpec(memory_space=pltpu.MemorySpace.VMEM)]
    for i in range(len(layer_dims)):
        inputs += [prep["weights"][i], prep["vecs"][i]]
        in_specs += [pl.BlockSpec(memory_space=pl.ANY),           # HBM, manual DMA
                     pl.BlockSpec(memory_space=pltpu.MemorySpace.VMEM)]

    kernel = functools.partial(categorical_nn_kernel, layer_dims, B)

    out_p = pl.pallas_call(
        kernel,
        out_shape=jax.ShapeDtypeStruct((b_pad, prep["out_pad"]), jnp.float32),
        in_specs=in_specs,
        out_specs=pl.BlockSpec(memory_space=pltpu.MemorySpace.VMEM),
        scratch_shapes=[
            pltpu.VMEM((2, max_in, max_out), wdtype),   # double-buffered weights
            pltpu.SemaphoreType.DMA((2,)),
        ],
        compiler_params=pltpu.CompilerParams(vmem_limit_bytes=vmem_limit),
    )(*inputs)

    return out_p[:B, :prep["output_dim"]]


# -----------------------------------------------------------------------------
# Init + pure-JAX reference
# -----------------------------------------------------------------------------
def init_params(key, input_dim, hidden_dims, output_dim, dtype=jnp.float32):
    """PyTorch-default-style init: U(-1/sqrt(fan_in), 1/sqrt(fan_in)) for
    Linear weight & bias; gamma=1, beta=0 for BatchNorm1d."""
    params = []
    prev = input_dim
    for h in hidden_dims:
        key, kw, kb = jax.random.split(key, 3)
        bound = 1.0 / jnp.sqrt(prev)
        w = jax.random.uniform(kw, (prev, h), dtype, -bound, bound)
        b = jax.random.uniform(kb, (1, h), dtype, -bound, bound)
        params += [w, b, jnp.ones((1, h), dtype), jnp.zeros((1, h), dtype)]
        prev = h
    key, kw, kb = jax.random.split(key, 3)
    bound = 1.0 / jnp.sqrt(prev)
    w_out = jax.random.uniform(kw, (prev, output_dim), dtype, -bound, bound)
    b_out = jax.random.uniform(kb, (1, output_dim), dtype, -bound, bound)
    params += [w_out, b_out]
    return params


def ref_forward(x, params):
    """Pure-JAX reference mirroring the PyTorch module's forward exactly."""
    h = x
    n_hidden = (len(params) - 2) // 4
    for i in range(n_hidden):
        w, b, g, be = params[4 * i:4 * i + 4]
        h = jnp.maximum(h @ w + b, 0.0)
        m = jnp.mean(h, axis=0, keepdims=True)
        v = jnp.mean((h - m) ** 2, axis=0, keepdims=True)       # biased var
        h = (h - m) / jnp.sqrt(v + EPS) * g + be
    w, b = params[-2], params[-1]
    return jax.nn.sigmoid(h @ w + b)


if __name__ == "__main__":
    # Small shapes consistent with the module: x is (batch, input_dim).
    batch, input_dim, hidden_dims, output_dim = 8, 16, (32, 64), 4

    key = jax.random.PRNGKey(0)
    key, kx = jax.random.split(key)
    x = jax.random.normal(kx, (batch, input_dim), jnp.float32)
    params = init_params(key, input_dim, hidden_dims, output_dim)
    ref = ref_forward(x, params)

    # f32 weights (matches PyTorch default dtype/semantics). Padding/casting
    # happens once here, NOT per forward call.
    prep_f32 = prepare_params(params, output_dim)
    out = jax.block_until_ready(categorical_nn_forward(x, prep_f32))
    assert out.shape == (batch, output_dim)
    assert jnp.allclose(out, ref, atol=2e-3, rtol=2e-3), float(
        jnp.max(jnp.abs(out - ref)))

    # bf16 weights: native-MXU dtype, half the weight HBM traffic
    # (recommended default on v6e/v7x) -- looser tolerance.
    prep_bf16 = prepare_params(params, output_dim, weight_dtype=jnp.bfloat16)
    out_bf16 = jax.block_until_ready(categorical_nn_forward(x, prep_bf16))
    assert jnp.allclose(out_bf16, ref, atol=5e-2)

    # Ragged batch (5 -> padded to 8) exercises the BN row-mask path.
    xr = x[:5]
    out_r = jax.block_until_ready(categorical_nn_forward(xr, prep_f32))
    ref_r = ref_forward(xr, params)
    assert out_r.shape == (5, output_dim)
    assert jnp.allclose(out_r, ref_r, atol=2e-3, rtol=2e-3)

    print("KERNEL_OK")
</pallas_src>

<mosaic_0001>
module attributes {stable_mosaic.version = 11 : i64} {
  func.func @categorical_nn_kernel(%arg0: memref<8x128xf32, #tpu.memory_space<vmem>>, %arg1: memref<128x128xf32, #tpu.memory_space<any>>, %arg2: memref<8x128xf32, #tpu.memory_space<vmem>>, %arg3: memref<128x128xf32, #tpu.memory_space<any>>, %arg4: memref<8x128xf32, #tpu.memory_space<vmem>>, %arg5: memref<128x128xf32, #tpu.memory_space<any>>, %arg6: memref<8x128xf32, #tpu.memory_space<vmem>>, %arg7: memref<8x128xf32, #tpu.memory_space<vmem>>, %arg8: memref<2x128x128xf32, #tpu.memory_space<vmem>>, %arg9: memref<2x!tpu.dma_semaphore, #tpu.memory_space<semaphore_mem>>) attributes {dimension_semantics = [], scalar_prefetch = 0 : i64, scratch_operands = 2 : i64, tpu.core_type = #tpu.core_type<tc>} {
    %c0_i32 = arith.constant 0 : i32
    %c0_i32_0 = arith.constant 0 : i32
    %c0_i32_1 = arith.constant 0 : i32
    %c0_i32_2 = arith.constant 0 : i32
    %0 = tpu.memref_slice %arg8[%c0_i32, %c0_i32_1, %c0_i32_2] : memref<2x128x128xf32, #tpu.memory_space<vmem>> -> memref<1x128x128xf32, #tpu.memory_space<vmem>>
    %1 = tpu.memref_squeeze %0 : memref<1x128x128xf32, #tpu.memory_space<vmem>> -> memref<128x128xf32, #tpu.memory_space<vmem>>
    %2 = tpu.memref_slice %arg9[%c0_i32_0] : memref<2x!tpu.dma_semaphore, #tpu.memory_space<semaphore_mem>> -> memref<1x!tpu.dma_semaphore, #tpu.memory_space<semaphore_mem>>
    %3 = tpu.memref_squeeze %2 : memref<1x!tpu.dma_semaphore, #tpu.memory_space<semaphore_mem>> -> memref<!tpu.dma_semaphore, #tpu.memory_space<semaphore_mem>>
    tpu.enqueue_dma source(%arg1 : memref<128x128xf32, #tpu.memory_space<any>>) target(%1 : memref<128x128xf32, #tpu.memory_space<vmem>>) target_semaphore(%3 : memref<!tpu.dma_semaphore, #tpu.memory_space<semaphore_mem>>)
    %c0 = arith.constant 0 : index
    %c0_3 = arith.constant 0 : index
    %4 = vector.load %arg0[%c0, %c0_3] : memref<8x128xf32, #tpu.memory_space<vmem>>, vector<8x128xf32>
    %c1_i32 = arith.constant 1 : i32
    %c1_i32_4 = arith.constant 1 : i32
    %c0_i32_5 = arith.constant 0 : i32
    %c0_i32_6 = arith.constant 0 : i32
    %5 = tpu.memref_slice %arg8[%c1_i32, %c0_i32_5, %c0_i32_6] : memref<2x128x128xf32, #tpu.memory_space<vmem>> -> memref<1x128x128xf32, #tpu.memory_space<vmem>>
    %6 = tpu.memref_squeeze %5 : memref<1x128x128xf32, #tpu.memory_space<vmem>> -> memref<128x128xf32, #tpu.memory_space<vmem>>
    %7 = tpu.memref_slice %arg9[%c1_i32_4] : memref<2x!tpu.dma_semaphore, #tpu.memory_space<semaphore_mem>> -> memref<1x!tpu.dma_semaphore, #tpu.memory_space<semaphore_mem>>
    %8 = tpu.memref_squeeze %7 : memref<1x!tpu.dma_semaphore, #tpu.memory_space<semaphore_mem>> -> memref<!tpu.dma_semaphore, #tpu.memory_space<semaphore_mem>>
    tpu.enqueue_dma source(%arg3 : memref<128x128xf32, #tpu.memory_space<any>>) target(%6 : memref<128x128xf32, #tpu.memory_space<vmem>>) target_semaphore(%8 : memref<!tpu.dma_semaphore, #tpu.memory_space<semaphore_mem>>)
    %c0_i32_7 = arith.constant 0 : i32
    %c0_i32_8 = arith.constant 0 : i32
    %c0_i32_9 = arith.constant 0 : i32
    %c0_i32_10 = arith.constant 0 : i32
    %9 = tpu.memref_slice %arg8[%c0_i32_7, %c0_i32_9, %c0_i32_10] : memref<2x128x128xf32, #tpu.memory_space<vmem>> -> memref<1x128x128xf32, #tpu.memory_space<vmem>>
    %10 = tpu.memref_squeeze %9 : memref<1x128x128xf32, #tpu.memory_space<vmem>> -> memref<128x128xf32, #tpu.memory_space<vmem>>
    %11 = tpu.memref_slice %arg9[%c0_i32_8] : memref<2x!tpu.dma_semaphore, #tpu.memory_space<semaphore_mem>> -> memref<1x!tpu.dma_semaphore, #tpu.memory_space<semaphore_mem>>
    %12 = tpu.memref_squeeze %11 : memref<1x!tpu.dma_semaphore, #tpu.memory_space<semaphore_mem>> -> memref<!tpu.dma_semaphore, #tpu.memory_space<semaphore_mem>>
    tpu.wait_dma2 semaphore(%12 : memref<!tpu.dma_semaphore, #tpu.memory_space<semaphore_mem>>) src(%arg1 : memref<128x128xf32, #tpu.memory_space<any>>) dst(%10 : memref<128x128xf32, #tpu.memory_space<vmem>>)
    %c0_11 = arith.constant 0 : index
    %c0_12 = arith.constant 0 : index
    %c0_13 = arith.constant 0 : index
    %13 = vector.load %arg8[%c0_11, %c0_12, %c0_13] : memref<2x128x128xf32, #tpu.memory_space<vmem>>, vector<1x128x128xf32>
    %14 = vector.shape_cast %13 : vector<1x128x128xf32> to vector<128x128xf32>
    %c0_14 = arith.constant 0 : index
    %c0_15 = arith.constant 0 : index
    %15 = vector.load %arg2[%c0_14, %c0_15] : memref<8x128xf32, #tpu.memory_space<vmem>>, vector<8x128xf32>
    %16 = vector.extract_strided_slice %15 {offsets = [0, 0], sizes = [1, 128], strides = [1, 1]} : vector<8x128xf32> to vector<1x128xf32>
    %cst = arith.constant dense<0.000000e+00> : vector<8x128xf32>
    %17 = tpu.matmul %4, %14, %cst {dimension_numbers = #tpu.dot_dimension_numbers<[1], [0], [0], [1], [0, 0, 1, 1], [], []>} : vector<8x128xf32>, vector<128x128xf32>, vector<8x128xf32> -> vector<8x128xf32>
    %18 = vector.broadcast %16 : vector<1x128xf32> to vector<8x128xf32>
    %19 = arith.addf %17, %18 : vector<8x128xf32>
    %20 = vector.extract_strided_slice %15 {offsets = [1, 0], sizes = [1, 128], strides = [1, 1]} : vector<8x128xf32> to vector<1x128xf32>
    %21 = vector.extract_strided_slice %15 {offsets = [2, 0], sizes = [1, 128], strides = [1, 1]} : vector<8x128xf32> to vector<1x128xf32>
    %cst_16 = arith.constant 0.000000e+00 : f32
    %22 = vector.broadcast %cst_16 : f32 to vector<8x128xf32>
    %23 = arith.maximumf %19, %22 : vector<8x128xf32>
    %cst_17 = arith.constant dense<0.000000e+00> : vector<128xf32>
    %24 = vector.multi_reduction <add>, %23, %cst_17 [0] : vector<8x128xf32> to vector<128xf32>
    %25 = vector.shape_cast %24 : vector<128xf32> to vector<1x128xf32>
    %cst_18 = arith.constant 1.250000e-01 : f32
    %26 = vector.broadcast %cst_18 : f32 to vector<1x128xf32>
    %27 = arith.mulf %25, %26 : vector<1x128xf32>
    %28 = vector.broadcast %27 : vector<1x128xf32> to vector<8x128xf32>
    %29 = arith.subf %23, %28 : vector<8x128xf32>
    %30 = arith.mulf %29, %29 : vector<8x128xf32>
    %cst_19 = arith.constant dense<0.000000e+00> : vector<128xf32>
    %31 = vector.multi_reduction <add>, %30, %cst_19 [0] : vector<8x128xf32> to vector<128xf32>
    %32 = vector.shape_cast %31 : vector<128xf32> to vector<1x128xf32>
    %cst_20 = arith.constant 1.250000e-01 : f32
    %33 = vector.broadcast %cst_20 : f32 to vector<1x128xf32>
    %34 = arith.mulf %32, %33 : vector<1x128xf32>
    %cst_21 = arith.constant 9.99999974E-6 : f32
    %35 = vector.broadcast %cst_21 : f32 to vector<1x128xf32>
    %36 = arith.addf %34, %35 : vector<1x128xf32>
    %37 = math.rsqrt %36 : vector<1x128xf32>
    %38 = arith.mulf %20, %37 : vector<1x128xf32>
    %39 = vector.broadcast %38 : vector<1x128xf32> to vector<8x128xf32>
    %40 = arith.mulf %29, %39 : vector<8x128xf32>
    %41 = vector.broadcast %21 : vector<1x128xf32> to vector<8x128xf32>
    %42 = arith.addf %40, %41 : vector<8x128xf32>
    %c0_i32_22 = arith.constant 0 : i32
    %c0_i32_23 = arith.constant 0 : i32
    %c0_i32_24 = arith.constant 0 : i32
    %c0_i32_25 = arith.constant 0 : i32
    %43 = tpu.memref_slice %arg8[%c0_i32_22, %c0_i32_24, %c0_i32_25] : memref<2x128x128xf32, #tpu.memory_space<vmem>> -> memref<1x128x128xf32, #tpu.memory_space<vmem>>
    %44 = tpu.memref_squeeze %43 : memref<1x128x128xf32, #tpu.memory_space<vmem>> -> memref<128x128xf32, #tpu.memory_space<vmem>>
    %45 = tpu.memref_slice %arg9[%c0_i32_23] : memref<2x!tpu.dma_semaphore, #tpu.memory_space<semaphore_mem>> -> memref<1x!tpu.dma_semaphore, #tpu.memory_space<semaphore_mem>>
    %46 = tpu.memref_squeeze %45 : memref<1x!tpu.dma_semaphore, #tpu.memory_space<semaphore_mem>> -> memref<!tpu.dma_semaphore, #tpu.memory_space<semaphore_mem>>
    tpu.enqueue_dma source(%arg5 : memref<128x128xf32, #tpu.memory_space<any>>) target(%44 : memref<128x128xf32, #tpu.memory_space<vmem>>) target_semaphore(%46 : memref<!tpu.dma_semaphore, #tpu.memory_space<semaphore_mem>>)
    %c1_i32_26 = arith.constant 1 : i32
    %c1_i32_27 = arith.constant 1 : i32
    %c0_i32_28 = arith.constant 0 : i32
    %c0_i32_29 = arith.constant 0 : i32
    %47 = tpu.memref_slice %arg8[%c1_i32_26, %c0_i32_28, %c0_i32_29] : memref<2x128x128xf32, #tpu.memory_space<vmem>> -> memref<1x128x128xf32, #tpu.memory_space<vmem>>
    %48 = tpu.memref_squeeze %47 : memref<1x128x128xf32, #tpu.memory_space<vmem>> -> memref<128x128xf32, #tpu.memory_space<vmem>>
    %49 = tpu.memref_slice %arg9[%c1_i32_27] : memref<2x!tpu.dma_semaphore, #tpu.memory_space<semaphore_mem>> -> memref<1x!tpu.dma_semaphore, #tpu.memory_space<semaphore_mem>>
    %50 = tpu.memref_squeeze %49 : memref<1x!tpu.dma_semaphore, #tpu.memory_space<semaphore_mem>> -> memref<!tpu.dma_semaphore, #tpu.memory_space<semaphore_mem>>
    tpu.wait_dma2 semaphore(%50 : memref<!tpu.dma_semaphore, #tpu.memory_space<semaphore_mem>>) src(%arg3 : memref<128x128xf32, #tpu.memory_space<any>>) dst(%48 : memref<128x128xf32, #tpu.memory_space<vmem>>)
    %c1 = arith.constant 1 : index
    %c0_30 = arith.constant 0 : index
    %c0_31 = arith.constant 0 : index
    %51 = vector.load %arg8[%c1, %c0_30, %c0_31] : memref<2x128x128xf32, #tpu.memory_space<vmem>>, vector<1x128x128xf32>
    %52 = vector.shape_cast %51 : vector<1x128x128xf32> to vector<128x128xf32>
    %c0_32 = arith.constant 0 : index
    %c0_33 = arith.constant 0 : index
    %53 = vector.load %arg4[%c0_32, %c0_33] : memref<8x128xf32, #tpu.memory_space<vmem>>, vector<8x128xf32>
    %54 = vector.extract_strided_slice %53 {offsets = [0, 0], sizes = [1, 128], strides = [1, 1]} : vector<8x128xf32> to vector<1x128xf32>
    %cst_34 = arith.constant dense<0.000000e+00> : vector<8x128xf32>
    %55 = tpu.matmul %42, %52, %cst_34 {dimension_numbers = #tpu.dot_dimension_numbers<[1], [0], [0], [1], [0, 0, 1, 1], [], []>} : vector<8x128xf32>, vector<128x128xf32>, vector<8x128xf32> -> vector<8x128xf32>
    %56 = vector.broadcast %54 : vector<1x128xf32> to vector<8x128xf32>
    %57 = arith.addf %55, %56 : vector<8x128xf32>
    %58 = vector.extract_strided_slice %53 {offsets = [1, 0], sizes = [1, 128], strides = [1, 1]} : vector<8x128xf32> to vector<1x128xf32>
    %59 = vector.extract_strided_slice %53 {offsets = [2, 0], sizes = [1, 128], strides = [1, 1]} : vector<8x128xf32> to vector<1x128xf32>
    %cst_35 = arith.constant 0.000000e+00 : f32
    %60 = vector.broadcast %cst_35 : f32 to vector<8x128xf32>
    %61 = arith.maximumf %57, %60 : vector<8x128xf32>
    %cst_36 = arith.constant dense<0.000000e+00> : vector<128xf32>
    %62 = vector.multi_reduction <add>, %61, %cst_36 [0] : vector<8x128xf32> to vector<128xf32>
    %63 = vector.shape_cast %62 : vector<128xf32> to vector<1x128xf32>
    %cst_37 = arith.constant 1.250000e-01 : f32
    %64 = vector.broadcast %cst_37 : f32 to vector<1x128xf32>
    %65 = arith.mulf %63, %64 : vector<1x128xf32>
    %66 = vector.broadcast %65 : vector<1x128xf32> to vector<8x128xf32>
    %67 = arith.subf %61, %66 : vector<8x128xf32>
    %68 = arith.mulf %67, %67 : vector<8x128xf32>
    %cst_38 = arith.constant dense<0.000000e+00> : vector<128xf32>
    %69 = vector.multi_reduction <add>, %68, %cst_38 [0] : vector<8x128xf32> to vector<128xf32>
    %70 = vector.shape_cast %69 : vector<128xf32> to vector<1x128xf32>
    %cst_39 = arith.constant 1.250000e-01 : f32
    %71 = vector.broadcast %cst_39 : f32 to vector<1x128xf32>
    %72 = arith.mulf %70, %71 : vector<1x128xf32>
    %cst_40 = arith.constant 9.99999974E-6 : f32
    %73 = vector.broadcast %cst_40 : f32 to vector<1x128xf32>
    %74 = arith.addf %72, %73 : vector<1x128xf32>
    %75 = math.rsqrt %74 : vector<1x128xf32>
    %76 = arith.mulf %58, %75 : vector<1x128xf32>
    %77 = vector.broadcast %76 : vector<1x128xf32> to vector<8x128xf32>
    %78 = arith.mulf %67, %77 : vector<8x128xf32>
    %79 = vector.broadcast %59 : vector<1x128xf32> to vector<8x128xf32>
    %80 = arith.addf %78, %79 : vector<8x128xf32>
    %c0_i32_41 = arith.constant 0 : i32
    %c0_i32_42 = arith.constant 0 : i32
    %c0_i32_43 = arith.constant 0 : i32
    %c0_i32_44 = arith.constant 0 : i32
    %81 = tpu.memref_slice %arg8[%c0_i32_41, %c0_i32_43, %c0_i32_44] : memref<2x128x128xf32, #tpu.memory_space<vmem>> -> memref<1x128x128xf32, #tpu.memory_space<vmem>>
    %82 = tpu.memref_squeeze %81 : memref<1x128x128xf32, #tpu.memory_space<vmem>> -> memref<128x128xf32, #tpu.memory_space<vmem>>
    %83 = tpu.memref_slice %arg9[%c0_i32_42] : memref<2x!tpu.dma_semaphore, #tpu.memory_space<semaphore_mem>> -> memref<1x!tpu.dma_semaphore, #tpu.memory_space<semaphore_mem>>
    %84 = tpu.memref_squeeze %83 : memref<1x!tpu.dma_semaphore, #tpu.memory_space<semaphore_mem>> -> memref<!tpu.dma_semaphore, #tpu.memory_space<semaphore_mem>>
    tpu.wait_dma2 semaphore(%84 : memref<!tpu.dma_semaphore, #tpu.memory_space<semaphore_mem>>) src(%arg5 : memref<128x128xf32, #tpu.memory_space<any>>) dst(%82 : memref<128x128xf32, #tpu.memory_space<vmem>>)
    %c0_45 = arith.constant 0 : index
    %c0_46 = arith.constant 0 : index
    %c0_47 = arith.constant 0 : index
    %85 = vector.load %arg8[%c0_45, %c0_46, %c0_47] : memref<2x128x128xf32, #tpu.memory_space<vmem>>, vector<1x128x128xf32>
    %86 = vector.shape_cast %85 : vector<1x128x128xf32> to vector<128x128xf32>
    %c0_48 = arith.constant 0 : index
    %c0_49 = arith.constant 0 : index
    %87 = vector.load %arg6[%c0_48, %c0_49] : memref<8x128xf32, #tpu.memory_space<vmem>>, vector<8x128xf32>
    %88 = vector.extract_strided_slice %87 {offsets = [0, 0], sizes = [1, 128], strides = [1, 1]} : vector<8x128xf32> to vector<1x128xf32>
    %cst_50 = arith.constant dense<0.000000e+00> : vector<8x128xf32>
    %89 = tpu.matmul %80, %86, %cst_50 {dimension_numbers = #tpu.dot_dimension_numbers<[1], [0], [0], [1], [0, 0, 1, 1], [], []>} : vector<8x128xf32>, vector<128x128xf32>, vector<8x128xf32> -> vector<8x128xf32>
    %90 = vector.broadcast %88 : vector<1x128xf32> to vector<8x128xf32>
    %91 = arith.addf %89, %90 : vector<8x128xf32>
    %cst_51 = arith.constant 5.000000e-01 : f32
    %92 = vector.broadcast %cst_51 : f32 to vector<8x128xf32>
    %93 = arith.mulf %92, %91 : vector<8x128xf32>
    %94 = math.tanh %93 : vector<8x128xf32>
    %cst_52 = arith.constant 5.000000e-01 : f32
    %95 = vector.broadcast %cst_52 : f32 to vector<8x128xf32>
    %96 = arith.mulf %95, %94 : vector<8x128xf32>
    %cst_53 = arith.constant 5.000000e-01 : f32
    %97 = vector.broadcast %cst_53 : f32 to vector<8x128xf32>
    %98 = arith.addf %96, %97 : vector<8x128xf32>
    %c0_54 = arith.constant 0 : index
    %c0_55 = arith.constant 0 : index
    %99 = vector.load %arg7[%c0_54, %c0_55] : memref<8x128xf32, #tpu.memory_space<vmem>>, vector<8x128xf32>
    tpu.vector_store %arg7[%c0_54, %c0_55], %98 {strides = array<i32>} : memref<8x128xf32, #tpu.memory_space<vmem>>, vector<8x128xf32>,
    return
  }
}

</mosaic_0001>

<bundles_post_ra>
// kernel: tpu_custom_call.1
= control target key start
LH: loop header
LB: loop body
LE: loop exit
PB: predicated region body
PF: predicated region fallthrough
CT: control target
= control target key end

     0   :  { %12 = vsyncpa [#allocation5], 0  ;;  %s1049_s0 = inlined_call_operand.hbm [shape: f32[8,128], index: 0, kind: input, shape index: {}]   ;;  %s1050_s1 = inlined_call_operand.hbm [shape: f32[128,128], index: 1, kind: input, shape index: {}]   ;;  %s1051_s2 = inlined_call_operand.hbm [shape: f32[8,128], index: 2, kind: input, shape index: {}]   ;;  %s1052_s3 = inlined_call_operand.hbm [shape: f32[128,128], index: 3, kind: input, shape index: {}]   ;;  %s1053_s4 = inlined_call_operand.vmem [shape: f32[8,128], index: 4, kind: input, shape index: {}]   ;;  %s1054_s5 = inlined_call_operand.hbm [shape: f32[128,128], index: 5, kind: input, shape index: {}]   ;;  %s1055_s6 = inlined_call_operand.vmem [shape: f32[8,128], index: 6, kind: input, shape index: {}]   ;;  %s1056_s7 = inlined_call_operand.hbm [shape: f32[8,128], index: 7, kind: output, shape index: {}]  }
   0x1   :  { %13 = vsyncpa [#allocation8], 0 }
   0x2   :  { %14 = vsyncpa [#allocation6], 0  ;;  %s843_s24 = smov [#allocation4]   ;;  %s844_s26 = smov [#allocation7]  }
   0x3   :  { %s21_s25 = sshll.u32 %s843_s24, 4  ;;  %s31_s27 = sshll.u32 %s844_s26, 4  ;;  %s22_s25 = int_to_ptr.vmem [resolvable:$true] %s21_s25  ;;  %s32_s27 = int_to_ptr.vmem [resolvable:$true] %s31_s27 }
   0x4   :  { %s699_s30 = scalar_lea.hbm %s1049_s0, 128 }
   0x5   :  { %p700_p0 = scmp.ne.s32.totalorder %s1049_s0, %s699_s30  ;;  %p703_p1 = scmp.lt.u32.totalorder %s699_s30, %s1049_s0 }
   0x7   :  { %p705_p2 = pnand %p703_p1, %p700_p0 }
   0x9   :  { %708 = shalt.err (!%p705_p2)
}
   0xa   :  { %s709_s12 = scalar_lea.vmem %s22_s25, 128  ;;  %p714_p4 = scmp.lt.s32.totalorder %s22_s25, %s22_s25 }
   0xb   :  { %p710_p3 = scmp.ne.s32.totalorder %s22_s25, %s709_s12  ;;  %p715_p5 = scmp.lt.s32.totalorder %s709_s12, %s709_s12 }
   0xd   :  { %p716_p6 = por %p715_p5, %p714_p4 }
   0xf   :  { %p717_p7 = pnand %p716_p6, %p710_p3 }
  0x11   :  { %720 = shalt.err (!%p717_p7)
}
  0x12   :  { %24 = dma.hbm_to_vmem [thread:$0]  %s1049_s0, 128, %s22_s25, [#allocation5]  }
  0x13   :  { %s721_s17 = scalar_lea.hbm %s1051_s2, 128 }
  0x14   :  { %p722_p8 = scmp.ne.s32.totalorder %s1051_s2, %s721_s17  ;;  %p725_p9 = scmp.lt.u32.totalorder %s721_s17, %s1051_s2 }
  0x16   :  { %p727_p10 = pnand %p725_p9, %p722_p8 }
  0x18   :  { %730 = shalt.err (!%p727_p10)
}
  0x19   :  { %s731_s22 = scalar_lea.vmem %s32_s27, 128  ;;  %p736_p12 = scmp.lt.s32.totalorder %s32_s27, %s32_s27 }
  0x1a   :  { %p732_p11 = scmp.ne.s32.totalorder %s32_s27, %s731_s22  ;;  %p737_p13 = scmp.lt.s32.totalorder %s731_s22, %s731_s22 }
  0x1c   :  { %p738_p0 = por %p737_p13, %p736_p12 }
  0x1e   :  { %p739_p1 = pnand %p738_p0, %p732_p11 }
  0x20   :  { %742 = shalt.err (!%p739_p1)
}
  0x21   :  { %34 = dma.hbm_to_vmem [thread:$0]  %s1051_s2, 128, %s32_s27, [#allocation8]  }
  0x22   :  { %831 = dma.done.wait [#allocation5], 128  }
  0x23   :  { %832 = vsyncadd [#allocation5], 4294967168 }
  0x24   :  { %833 = dma.done.wait [#allocation8], 128  }
  0x25   :  { %834 = vsyncadd [#allocation8], 4294967168  ;;  %s845_s24 = smov [#allocation2]   ;;  %s846_s26 = smov [#allocation2 + $0x80]  }
  0x26   :  { %s52_s25 = sshll.u32 %s845_s24, 4  ;;  %s66_s28 = sshll.u32 %s846_s26, 4  ;;  %s915_s25 = int_to_ptr.vmem [resolvable:$true] %s52_s25  ;;  %s67_s28 = int_to_ptr.vmem [resolvable:$true] %s66_s28 }
  0x27   :  { %s743_s8 = scalar_lea.hbm %s1050_s1, 2048 }
  0x28   :  { %p744_p2 = scmp.ne.s32.totalorder %s1050_s1, %s743_s8  ;;  %p747_p3 = scmp.lt.u32.totalorder %s743_s8, %s1050_s1 }
  0x2a   :  { %p749_p4 = pnand %p747_p3, %p744_p2 }
  0x2c   :  { %752 = shalt.err (!%p749_p4)  }
  0x2d   :  { %s753_s11 = scalar_lea.vmem %s915_s25, 2048  ;;  %s757_s13 = scalar_lea.vmem %s915_s25, 4096 }
  0x2e   :  { %p928_p5 = scmp.ne.s32.totalorder %s915_s25, %s753_s11  ;;  %p758_p6 = scmp.lt.s32.totalorder %s915_s25, %s915_s25 }
  0x2f   :  { %p759_p7 = scmp.lt.s32.totalorder %s757_s13, %s753_s11 }
  0x31   :  { %p935_p8 = por %p759_p7, %p758_p6 }
  0x33   :  { %p761_p9 = pnand %p935_p8, %p928_p5 }
  0x35   :  { %764 = shalt.err (!%p761_p9)  }
  0x36   :  { %55 = dma.hbm_to_vmem [thread:$0]  %s1050_s1, 2048, %s915_s25, [#allocation3] }
  0x37   :  { %s765_s19 = scalar_lea.hbm %s1052_s3, 2048 }
  0x38   :  { %p766_p10 = scmp.ne.s32.totalorder %s1052_s3, %s765_s19  ;;  %p769_p11 = scmp.lt.u32.totalorder %s765_s19, %s1052_s3 }
  0x3a   :  { %p771_p12 = pnand %p769_p11, %p766_p10 }
  0x3c   :  { %774 = shalt.err (!%p771_p12)  }
  0x3d   :  { %s775_s23 = scalar_lea.vmem %s67_s28, 2048  ;;  %p780_p0 = scmp.lt.s32.totalorder %s67_s28, %s915_s25 }
  0x3e   :  { %p776_p13 = scmp.ne.s32.totalorder %s67_s28, %s775_s23  ;;  %p781_p1 = scmp.lt.s32.totalorder %s757_s13, %s775_s23 }
  0x40   :  { %p782_p2 = por %p781_p1, %p780_p0 }
  0x42   :  { %p783_p3 = pnand %p782_p2, %p776_p13 }
  0x44   :  { %786 = shalt.err (!%p783_p3)  }
  0x45   :  { %69 = dma.hbm_to_vmem [thread:$0]  %s1052_s3, 2048, %s67_s28, [#allocation3 + $0x1]  ;;  %v56_v0 = vld [vmem:[#allocation4] sm:$0xff] }
  0x46   :  { %835 = dma.done.wait [#allocation3], 2048 }
  0x47   :  { %836 = vsyncadd [#allocation3], 4294965248  ;;  %v847_v1 = vmov 0.0|0.0   ;;  %vm848_vm0 = vmmov 0   ;;  %v849_v2 = vmov 0.0   ;;  %v73_v3 = vld [vmem:[#allocation2] sm:$0xff] }
  0x48   :  { %613 = vmatprep.subr.bf16.mxu0 %v847_v1  ;;  %540 = vmatprep.mubr.msk.f32.mxu0 %vm848_vm0, %v849_v2  ;;  %v74_v4 = vld [vmem:[#allocation2 + $0x8] sm:$0xff]  ;;  %v75_v5 = vld [vmem:[#allocation2 + $0x10] sm:$0xff]  ;;  %v76_v7 = vld [vmem:[#allocation2 + $0x18] sm:$0xff]  ;;  %s787_s28 = scalar_lea.hbm %s1054_s5, 2048 }
  0x49   :  { %v614_v6 = vpack.c.bf16 %v74_v4, %v73_v3  ;;  %v77_v8 = vld [vmem:[#allocation2 + $0x20] sm:$0xff]  ;;  %v78_v9 = vld [vmem:[#allocation2 + $0x28] sm:$0xff]  ;;  %v617_v10 = vpack.c.bf16 %v76_v7, %v75_v5  ;;  %v79_v11 = vld [vmem:[#allocation2 + $0x30] sm:$0xff]  ;;  %p788_p4 = scmp.ne.s32.totalorder %s1054_s5, %s787_s28  ;;  %p791_p6 = scmp.lt.u32.totalorder %s787_s28, %s1054_s5 }
  0x4a   :  { %v80_v12 = vld [vmem:[#allocation2 + $0x38] sm:$0xff]  ;;  %v81_v13 = vld [vmem:[#allocation2 + $0x40] sm:$0xff]  ;;  %v82_v14 = vld [vmem:[#allocation2 + $0x48] sm:$0xff] }
  0x4b   :  { %615 = vmatpush3.bf16.msra.mxu0 %v614_v6  ;;  %v83_v15 = vld [vmem:[#allocation2 + $0x50] sm:$0xff]  ;;  %v84_v16 = vld [vmem:[#allocation2 + $0x58] sm:$0xff]  ;;  %v85_v17 = vld [vmem:[#allocation2 + $0x60] sm:$0xff]  ;;  %p793_p7 = pnand %p791_p6, %p788_p4 }
  0x4c   :  { %616 = vmatprep.subr.bf16.mxu0 %v847_v1  ;;  %v86_v18 = vld [vmem:[#allocation2 + $0x68] sm:$0xff]  ;;  %v87_v19 = vld [vmem:[#allocation2 + $0x70] sm:$0xff]  ;;  %v88_v20 = vld [vmem:[#allocation2 + $0x78] sm:$0xff] }
  0x4d   :  { %796 = shalt.err (!%p793_p7)  }
  0x4e   :  { %808 = shalt.err (!%p761_p9)  }
  0x4f   :  { %204 = dma.hbm_to_vmem [thread:$0]  %s1054_s5, 2048, %s915_s25, [#allocation3]  ;;  %618 = vmatpush3.bf16.msra.mxu0 %v617_v10  ;;  %v620_v21 = vpack.c.bf16 %v78_v9, %v77_v8  ;;  %v623_v22 = vpack.c.bf16 %v80_v12, %v79_v11  ;;  %v626_v23 = vpack.c.bf16 %v82_v14, %v81_v13  ;;  %v629_v24 = vpack.c.bf16 %v84_v16, %v83_v15  ;;  %v89_v30 = vld [vmem:[#allocation7] sm:$0xff] }
  0x50   :  { %619 = vmatprep.subr.bf16.mxu0 %v847_v1  ;;  %v632_v25 = vpack.c.bf16 %v86_v18, %v85_v17  ;;  %v635_v26 = vpack.c.bf16 %v88_v20, %v87_v19  ;;  %v90_v27 = vlaneseq }
  0x52   :  { %v993_v28 = vshrl.u32 %v90_v27, 7 }
  0x53   :  { %621 = vmatpush3.bf16.msra.mxu0 %v620_v21 }
  0x54   :  { %622 = vmatprep.subr.bf16.mxu0 %v847_v1  ;;  %v996_v29 = vsub.s32 0, %v993_v28  ;;  %v186_v53 = vsub.s32 1, %v993_v28  ;;  %v191_v54 = vsub.s32 2, %v993_v28 }
  0x56   :  { %v93_v31 = vrot.slane %v89_v30, %v996_v29  ;;  %v192_v58 = vrot.slane %v89_v30, %v191_v54 }
  0x57   :  { %624 = vmatpush3.bf16.msra.mxu0 %v623_v22 }
  0x58   :  { %625 = vmatprep.subr.bf16.mxu0 %v847_v1 }
  0x5b   :  { %627 = vmatpush3.bf16.msra.mxu0 %v626_v23 }
  0x5c   :  { %628 = vmatprep.subr.bf16.mxu0 %v847_v1 }
  0x5f   :  { %630 = vmatpush3.bf16.msra.mxu0 %v629_v24 }
  0x60   :  { %631 = vmatprep.subr.bf16.mxu0 %v847_v1 }
  0x63   :  { %633 = vmatpush3.bf16.msra.mxu0 %v632_v25 }
  0x64   :  { %634 = vmatprep.subr.bf16.mxu0 %v847_v1 }
  0x67   :  { %636 = vmatpush3.bf16.msra.mxu0 %v635_v26 }
  0x6a   :  { %541 = vmatmul.mubr.f32.vlgmr.msra.gmra.mrb[0].mxu0 %v56_v0 }
 0x13d   :  { %v160_v32 = vpop.f32.mrb[0].mxu0 }
 0x13e   :  { %v161_v33 = vadd.f32 %v160_v32, %v93_v31  ;;  %v542_v34 = vpop.f32.mrb[1].mxu0 }
 0x140   :  { %v164_v35 = vmax.f32 %v161_v33, 0.0 }
 0x142   :  { %v165_v36 = vrot.slane %v164_v35, 4 }
 0x144   :  { %v166_v37 = vadd.f32 %v165_v36, %v164_v35 }
 0x146   :  { %v167_v38 = vrot.slane %v166_v37, 2 }
 0x148   :  { %v168_v39 = vadd.f32 %v167_v38, %v166_v37 }
 0x14a   :  { %v169_v40 = vrot.slane %v168_v39, 1 }
 0x14c   :  { %v170_v41 = vadd.f32 %v169_v40, %v168_v39 }
 0x14e   :  { %v171_v42 = vmul.f32 0.125, %v170_v41 }
 0x150   :  { %v172_v43 = vsub.f32 %v164_v35, %v171_v42 }
 0x152   :  { %v173_v44 = vmul.f32 %v172_v43, %v172_v43 }
 0x154   :  { %v174_v45 = vrot.slane %v173_v44, 4 }
 0x156   :  { %v175_v46 = vadd.f32 %v174_v45, %v173_v44 }
 0x158   :  { %v176_v47 = vrot.slane %v175_v46, 2 }
 0x15a   :  { %v177_v48 = vadd.f32 %v176_v47, %v175_v46 }
 0x15c   :  { %v178_v49 = vrot.slane %v177_v48, 1 }
 0x15e   :  { %v179_v50 = vadd.f32 %v178_v49, %v177_v48 }
 0x160   :  { %v180_v51 = vmul.f32 0.125, %v179_v50 }
 0x162   :  { %v181_v52 = vadd.f32 1e-05, %v180_v51 }
 0x164   :  { %693 = vrsqrt.f32 %v181_v52 }
 0x16e   :  { %v694_v55 = vpop.eup %693 }
 0x16f   :  { %v183_v56 = vmul.f32 %v694_v55, %v89_v30 }
 0x171   :  { %v187_v57 = vrot.slane %v183_v56, %v186_v53 }
 0x173   :  { %v188_v59 = vmul.f32 %v187_v57, %v172_v43 }
 0x175   :  { %v193_v60 = vadd.f32 %v192_v58, %v188_v59 }
 0x176   :  { %837 = dma.done.wait [#allocation3 + $0x1], 2048 }
 0x177   :  { %838 = vsyncadd [#allocation3 + $0x1], 4294965248  ;;  %637 = vmatprep.subr.bf16.mxu1 %v847_v1  ;;  %575 = vmatprep.mubr.msk.f32.mxu1 %vm848_vm0, %v849_v2  ;;  %v207_v61 = vld [vmem:[#allocation2 + $0x80] sm:$0xff]  ;;  %v208_v62 = vld [vmem:[#allocation2 + $0x88] sm:$0xff] }
 0x178   :  { %v209_v63 = vld [vmem:[#allocation2 + $0x90] sm:$0xff]  ;;  %v638_v0 = vpack.c.bf16 %v208_v62, %v207_v61  ;;  %v210_v3 = vld [vmem:[#allocation2 + $0x98] sm:$0xff]  ;;  %v211_v5 = vld [vmem:[#allocation2 + $0xa0] sm:$0xff] }
 0x179   :  { %v641_v4 = vpack.c.bf16 %v210_v3, %v209_v63  ;;  %v212_v6 = vld [vmem:[#allocation2 + $0xa8] sm:$0xff]  ;;  %v213_v8 = vld [vmem:[#allocation2 + $0xb0] sm:$0xff]  ;;  %v214_v9 = vld [vmem:[#allocation2 + $0xb8] sm:$0xff] }
 0x17a   :  { %639 = vmatpush3.bf16.msra.mxu1 %v638_v0  ;;  %v644_v7 = vpack.c.bf16 %v212_v6, %v211_v5  ;;  %v647_v10 = vpack.c.bf16 %v214_v9, %v213_v8  ;;  %v215_v11 = vld [vmem:[#allocation2 + $0xc0] sm:$0xff]  ;;  %v216_v12 = vld [vmem:[#allocation2 + $0xc8] sm:$0xff]  ;;  %v217_v14 = vld [vmem:[#allocation2 + $0xd0] sm:$0xff] }
 0x17b   :  { %640 = vmatprep.subr.bf16.mxu1 %v847_v1  ;;  %v650_v13 = vpack.c.bf16 %v216_v12, %v215_v11  ;;  %v218_v15 = vld [vmem:[#allocation2 + $0xd8] sm:$0xff]  ;;  %v219_v17 = vld [vmem:[#allocation2 + $0xe0] sm:$0xff]  ;;  %v220_v18 = vld [vmem:[#allocation2 + $0xe8] sm:$0xff] }
 0x17c   :  { %v653_v16 = vpack.c.bf16 %v218_v15, %v217_v14  ;;  %v656_v19 = vpack.c.bf16 %v220_v18, %v219_v17  ;;  %v221_v20 = vld [vmem:[#allocation2 + $0xf0] sm:$0xff]  ;;  %v222_v21 = vld [vmem:[#allocation2 + $0xf8] sm:$0xff]  ;;  %v223_v23 = vld [vmem:[%s1053_s4] sm:$0xff] }
 0x17d   :  { %v659_v22 = vpack.c.bf16 %v222_v21, %v221_v20  ;;  %v227_v24 = vrot.slane %v223_v23, %v996_v29  ;;  %v326_v51 = vrot.slane %v223_v23, %v191_v54 }
 0x17e   :  { %642 = vmatpush3.bf16.msra.mxu1 %v641_v4 }
 0x17f   :  { %643 = vmatprep.subr.bf16.mxu1 %v847_v1 }
 0x182   :  { %645 = vmatpush3.bf16.msra.mxu1 %v644_v7 }
 0x183   :  { %646 = vmatprep.subr.bf16.mxu1 %v847_v1 }
 0x186   :  { %648 = vmatpush3.bf16.msra.mxu1 %v647_v10 }
 0x187   :  { %649 = vmatprep.subr.bf16.mxu1 %v847_v1 }
 0x18a   :  { %651 = vmatpush3.bf16.msra.mxu1 %v650_v13 }
 0x18b   :  { %652 = vmatprep.subr.bf16.mxu1 %v847_v1 }
 0x18e   :  { %654 = vmatpush3.bf16.msra.mxu1 %v653_v16 }
 0x18f   :  { %655 = vmatprep.subr.bf16.mxu1 %v847_v1 }
 0x192   :  { %657 = vmatpush3.bf16.msra.mxu1 %v656_v19 }
 0x193   :  { %658 = vmatprep.subr.bf16.mxu1 %v847_v1 }
 0x196   :  { %660 = vmatpush3.bf16.msra.mxu1 %v659_v22 }
 0x199   :  { %576 = vmatmul.mubr.f32.vlgmr.msra.gmra.mrb[0].mxu1 %v193_v60 }
 0x26c   :  { %v294_v25 = vpop.f32.mrb[0].mxu1 }
 0x26d   :  { %v295_v26 = vadd.f32 %v294_v25, %v227_v24  ;;  %v577_v27 = vpop.f32.mrb[1].mxu1 }
 0x26f   :  { %v298_v30 = vmax.f32 %v295_v26, 0.0 }
 0x271   :  { %v299_v31 = vrot.slane %v298_v30, 4 }
 0x273   :  { %v300_v32 = vadd.f32 %v299_v31, %v298_v30 }
 0x275   :  { %v301_v33 = vrot.slane %v300_v32, 2 }
 0x277   :  { %v302_v34 = vadd.f32 %v301_v33, %v300_v32 }
 0x279   :  { %v303_v35 = vrot.slane %v302_v34, 1 }
 0x27b   :  { %v304_v36 = vadd.f32 %v303_v35, %v302_v34 }
 0x27d   :  { %v305_v37 = vmul.f32 0.125, %v304_v36 }
 0x27f   :  { %v306_v38 = vsub.f32 %v298_v30, %v305_v37 }
 0x281   :  { %v307_v39 = vmul.f32 %v306_v38, %v306_v38 }
 0x283   :  { %v308_v40 = vrot.slane %v307_v39, 4 }
 0x285   :  { %v309_v41 = vadd.f32 %v308_v40, %v307_v39 }
 0x287   :  { %v310_v42 = vrot.slane %v309_v41, 2 }
 0x289   :  { %v311_v43 = vadd.f32 %v310_v42, %v309_v41 }
 0x28b   :  { %v312_v44 = vrot.slane %v311_v43, 1 }
 0x28d   :  { %v313_v45 = vadd.f32 %v312_v44, %v311_v43 }
 0x28f   :  { %v314_v46 = vmul.f32 0.125, %v313_v45 }
 0x291   :  { %v315_v47 = vadd.f32 1e-05, %v314_v46 }
 0x293   :  { %695 = vrsqrt.f32 %v315_v47 }
 0x29d   :  { %v696_v48 = vpop.eup %695 }
 0x29e   :  { %v317_v49 = vmul.f32 %v696_v48, %v223_v23 }
 0x2a0   :  { %v321_v50 = vrot.slane %v317_v49, %v186_v53 }
 0x2a2   :  { %v322_v52 = vmul.f32 %v321_v50, %v306_v38 }
 0x2a4   :  { %v327_v55 = vadd.f32 %v326_v51, %v322_v52 }
 0x2a5   :  { %839 = dma.done.wait [#allocation3], 2048 }
 0x2a6   :  { %840 = vsyncadd [#allocation3], 4294965248  ;;  %661 = vmatprep.subr.bf16.mxu0 %v847_v1  ;;  %610 = vmatprep.mubr.msk.f32.mxu0 %vm848_vm0, %v849_v2  ;;  %v330_v56 = vld [vmem:[#allocation2] sm:$0xff]  ;;  %v331_v57 = vld [vmem:[#allocation2 + $0x8] sm:$0xff]  ;;  %s850_s11 = smov [#allocation9]  }
 0x2a7   :  { %v332_v58 = vld [vmem:[#allocation2 + $0x10] sm:$0xff]  ;;  %v662_v59 = vpack.c.bf16 %v331_v57, %v330_v56  ;;  %v333_v60 = vld [vmem:[#allocation2 + $0x18] sm:$0xff]  ;;  %v334_v28 = vld [vmem:[#allocation2 + $0x20] sm:$0xff]  ;;  %s432_s12 = sshll.u32 %s850_s11, 4  ;;  %s433_s12 = int_to_ptr.vmem [resolvable:$true] %s432_s12 }
 0x2a8   :  { %v665_v61 = vpack.c.bf16 %v333_v60, %v332_v58  ;;  %v335_v53 = vld [vmem:[#allocation2 + $0x28] sm:$0xff]  ;;  %v336_v62 = vld [vmem:[#allocation2 + $0x30] sm:$0xff]  ;;  %v337_v63 = vld [vmem:[#allocation2 + $0x38] sm:$0xff]  ;;  %s809_s13 = scalar_lea.vmem %s433_s12, 128  ;;  %p814_p8 = scmp.lt.s32.totalorder %s433_s12, %s433_s12 }
 0x2a9   :  { %663 = vmatpush3.bf16.msra.mxu0 %v662_v59  ;;  %v668_v54 = vpack.c.bf16 %v335_v53, %v334_v28  ;;  %v671_v0 = vpack.c.bf16 %v337_v63, %v336_v62  ;;  %v338_v2 = vld [vmem:[#allocation2 + $0x40] sm:$0xff]  ;;  %v339_v3 = vld [vmem:[#allocation2 + $0x48] sm:$0xff]  ;;  %v340_v5 = vld [vmem:[#allocation2 + $0x50] sm:$0xff]  ;;  %p810_p5 = scmp.ne.s32.totalorder %s433_s12, %s809_s13  ;;  %p815_p9 = scmp.lt.s32.totalorder %s809_s13, %s809_s13 }
 0x2aa   :  { %664 = vmatprep.subr.bf16.mxu0 %v847_v1  ;;  %v674_v4 = vpack.c.bf16 %v339_v3, %v338_v2  ;;  %v341_v6 = vld [vmem:[#allocation2 + $0x58] sm:$0xff]  ;;  %v342_v8 = vld [vmem:[#allocation2 + $0x60] sm:$0xff]  ;;  %v343_v9 = vld [vmem:[#allocation2 + $0x68] sm:$0xff] }
 0x2ab   :  { %v677_v7 = vpack.c.bf16 %v341_v6, %v340_v5  ;;  %v680_v10 = vpack.c.bf16 %v343_v9, %v342_v8  ;;  %v344_v11 = vld [vmem:[#allocation2 + $0x70] sm:$0xff]  ;;  %v345_v12 = vld [vmem:[#allocation2 + $0x78] sm:$0xff]  ;;  %v346_v14 = vld [vmem:[%s1055_s6] sm:$0xff]  ;;  %p816_p10 = por %p815_p9, %p814_p8 }
 0x2ac   :  { %v683_v13 = vpack.c.bf16 %v345_v12, %v344_v11  ;;  %v350_v15 = vrot.slane %v346_v14, %v996_v29 }
 0x2ad   :  { %666 = vmatpush3.bf16.msra.mxu0 %v665_v61  ;;  %p817_p11 = pnand %p816_p10, %p810_p5 }
 0x2ae   :  { %667 = vmatprep.subr.bf16.mxu0 %v847_v1 }
 0x2b1   :  { %669 = vmatpush3.bf16.msra.mxu0 %v668_v54 }
 0x2b2   :  { %670 = vmatprep.subr.bf16.mxu0 %v847_v1 }
 0x2b5   :  { %672 = vmatpush3.bf16.msra.mxu0 %v671_v0 }
 0x2b6   :  { %673 = vmatprep.subr.bf16.mxu0 %v847_v1 }
 0x2b9   :  { %675 = vmatpush3.bf16.msra.mxu0 %v674_v4 }
 0x2ba   :  { %676 = vmatprep.subr.bf16.mxu0 %v847_v1 }
 0x2bd   :  { %678 = vmatpush3.bf16.msra.mxu0 %v677_v7 }
 0x2be   :  { %679 = vmatprep.subr.bf16.mxu0 %v847_v1 }
 0x2c1   :  { %681 = vmatpush3.bf16.msra.mxu0 %v680_v10 }
 0x2c2   :  { %682 = vmatprep.subr.bf16.mxu0 %v847_v1 }
 0x2c5   :  { %684 = vmatpush3.bf16.msra.mxu0 %v683_v13 }
 0x2c8   :  { %611 = vmatmul.mubr.f32.vlgmr.msra.gmra.mrb[2].mxu0 %v327_v55 }
 0x39b   :  { %v417_v16 = vpop.f32.mrb[2].mxu0 }
 0x39c   :  { %v418_v17 = vadd.f32 %v417_v16, %v350_v15  ;;  %v612_v18 = vpop.f32.mrb[3].mxu0 }
 0x39e   :  { %v421_v19 = vmul.f32 0.5, %v418_v17 }
 0x3a0   :  { %697 = vtanh.f32 %v421_v19 }
 0x3aa   :  { %v698_v20 = vpop.eup %697 }
 0x3ab   :  { %v423_v21 = vmul.f32 0.5, %v698_v20 }
 0x3ad   :  { %v424_v22 = vadd.f32 0.5, %v423_v21 }
 0x3af   :  { %425 = vst [vmem:[#allocation9] sm:$0xff] %v424_v22 }
 0x3b0   :  { %820 = shalt.err (!%p817_p11)
}
 0x3b1   :  { %s821_s15 = scalar_lea.hbm %s1056_s7, 128 }
 0x3b2   :  { %p822_p12 = scmp.ne.s32.totalorder %s1056_s7, %s821_s15  ;;  %p825_p13 = scmp.lt.u32.totalorder %s821_s15, %s1056_s7 }
 0x3b4   :  { %p827_p0 = pnand %p825_p13, %p822_p12 }
 0x3b6   :  { %830 = shalt.err (!%p827_p0)
}
 0x3b7   :  { %435 = dma.vmem_to_hbm [thread:$0]  %s433_s12, 128, %s1056_s7, [#allocation6]  }
 0x3b8   :  { %841 = dma.done.wait [#allocation6], 128  }
 0x3b9   :  { %842 = vsyncadd [#allocation6], 4294967168 }
 0x3ba   :  { %439 = vsyncpa [#allocation5], 1 }
 0x3bb   :  { %440 = vsyncpa [#allocation8], 1 }
 0x3bc   :  { %441 = vsyncpa [#allocation6], 1 }
 0x3bd   :  { %442 = vsyncmov [#allocation3] }
 0x3c0   :  { %s443_s22 = vpop.sfrf %442 }
 0x3c1   :  { %p455_p1 = scmp.ne.s32.totalorder %s443_s22, 0 }
 0x3c3   :  { %447 = shalt.err (%p455_p1)  }
 0x3c4   :  { %449 = vsyncmov [#allocation3 + $0x1] }
 0x3c7   :  { %s450_s0 = vpop.sfrf %449 }
 0x3c8   :  { %p456_p2 = scmp.ne.s32.totalorder %s450_s0, 0 }
 0x3ca   :  { %454 = shalt.err (%p456_p2)  }

</bundles_post_ra>
